<compile_context>
chip_gen: v7x
topology: tpu7x:2x2x1
jax: 0.10.0
libtpu: 0.0.40
codegen_flags: <defaults>
</compile_context>

<pallas_src>
import functools

import jax
import jax.numpy as jnp
from jax import lax
from jax.experimental import pallas as pl
from jax.experimental.pallas import tpu as pltpu


def _round_up(x, m):
    return ((x + m - 1) // m) * m


def _vmem_capacity_bytes():
    # Per-TensorCore VMEM: 128 MiB on v5e/v6e, 64 MiB on v7x.
    try:
        return int(pltpu.get_tpu_info().vmem_capacity_bytes)
    except Exception:
        return 64 * 1024 * 1024  # conservative fallback (v7x)


def _context_kernel(scores_ref, values_ref, out_ref, acc_ref, *, tail_valid):
    # scores_ref: (TB, 1, TL)   values_ref: (TB, TL, K)
    # out_ref:    (1, TB, K)    acc_ref:    (TB, K) f32 VMEM scratch
    l = pl.program_id(1)
    nl = pl.num_programs(1)

    @pl.when(l == 0)
    def _init():
        acc_ref[...] = jnp.zeros_like(acc_ref)

    s = scores_ref[...]
    v = values_ref[...]

    if tail_valid is not None:
        # Final L block is partial: values rows >= tail_valid hold undefined
        # buffer contents (matching scores rows were zero-padded, but 0 * NaN
        # is still NaN), so mask the values tail to zero on the last L step.
        tl = v.shape[1]
        row = lax.broadcasted_iota(jnp.int32, (1, tl, 1), 1)
        limit = jnp.where(l == nl - 1, tail_valid, tl)
        v = jnp.where(row < limit, v, jnp.array(0, v.dtype))

    cdt = jnp.promote_types(s.dtype, v.dtype)
    # Batched (1, TL) x (TL, K) contraction with f32 accumulation.  HBM-bound
    # on the values stream, so this compute hides entirely under the DMA.
    part = jnp.einsum(
        "bql,blk->bqk",
        s.astype(cdt),
        v.astype(cdt),
        preferred_element_type=jnp.float32,
    )  # (TB, 1, K)
    acc_ref[...] += part[:, 0, :]

    @pl.when(l == nl - 1)
    def _finalize():
        out_ref[0] = acc_ref[...].astype(out_ref.dtype)  # [1, TB, K] block


def compute_context(scores, values, *, values_compute_dtype=None):
    """Pallas equivalent of Attention.compute_context.

    Args:
        scores: [batch_size, 1, src_length]
        values: [batch_size, src_length, encoder_hidden_dim * 2]
        values_compute_dtype: optional narrower dtype (e.g. jnp.bfloat16) for
            the values stream; halves the dominant HBM traffic while keeping
            f32 accumulation.  Default None preserves torch.bmm numerics.
    Returns:
        [1, batch_size, encoder_hidden_dim * 2]
    """
    B, one, L = scores.shape
    assert one == 1
    Bv, Lv, K = values.shape
    assert Bv == B and Lv == L

    out_dtype = jnp.result_type(scores.dtype, values.dtype)
    if values_compute_dtype is not None:
        values = values.astype(values_compute_dtype)

    v_item = jnp.dtype(values.dtype).itemsize
    s_item = jnp.dtype(scores.dtype).itemsize
    o_item = jnp.dtype(out_dtype).itemsize

    # ---- Block budget from detected per-TensorCore VMEM.
    vmem_cap = _vmem_capacity_bytes()
    block_budget = max(1 << 20, min(vmem_cap // 8, 16 << 20))

    # ---- Batch tile TB: as large as the budget allows (multiple of 8 for the
    # output sublane constraint), but capped so the batch axis has >= 2 blocks
    # when B > 8 so both of v7x's TensorCores can stream values concurrently.
    per_batch = max(L * K * v_item, 1)
    if B <= 8:
        tb = B  # single block; block dims equal full array dims
    else:
        tb = max(8, (block_budget // per_batch // 8) * 8)
        half = max(8, (((B + 1) // 2) // 8) * 8)
        tb = min(tb, half)
    num_b = pl.cdiv(B, tb)

    # ---- Reduction (src_length) tile TL: only when even a minimal-TB block
    # would blow the budget (long sources / wide K, v7x's 64 MiB VMEM).
    tl = L
    tail_valid = None
    scores_in = scores
    if tb * L * K * v_item > block_budget and L > 128:
        tl = (block_budget // max(tb * K * v_item, 1) // 128) * 128
        tl = min(max(tl, 128), (L // 128) * 128)
    num_l = pl.cdiv(L, tl)
    if num_l > 1 and L % tl != 0:
        # Zero-pad only the (tiny) scores so every scores block is valid data;
        # values keep their exact HBM layout (tail rows masked in-kernel).
        tail_valid = L % tl
        scores_in = jnp.pad(scores, ((0, 0), (0, 0), (0, num_l * tl - L)))

    # ---- Scoped-VMEM limit: cover the double-buffered blocks + scratch +
    # margin, clamped to 90% of physical VMEM (never below what blocks need).
    values_blk = tb * tl * K * v_item
    scores_blk = tb * 8 * _round_up(tl, 128) * s_item  # (1,TL) pads to 8 sublanes
    out_blk = _round_up(tb, 8) * _round_up(K, 128) * o_item
    acc_blk = _round_up(tb, 8) * _round_up(K, 128) * 4
    needed = 2 * (values_blk + scores_blk + out_blk) + acc_blk
    vmem_limit = int(min(max(needed + (8 << 20), 16 << 20), (vmem_cap * 9) // 10))

    # Advisory cost estimate: lets XLA overlap neighbours with this long,
    # memory-bound custom call.
    cost = pl.CostEstimate(
        flops=2 * B * L * K,
        transcendentals=0,
        bytes_accessed=B * L * K * v_item + B * L * s_item + B * K * o_item,
    )

    kernel = functools.partial(_context_kernel, tail_valid=tail_valid)

    out = pl.pallas_call(
        kernel,
        out_shape=jax.ShapeDtypeStruct((1, B, K), out_dtype),
        grid_spec=pltpu.PrefetchScalarGridSpec(
            num_scalar_prefetch=0,
            grid=(num_b, num_l),  # reduction axis last
            in_specs=[
                pl.BlockSpec((tb, 1, tl), lambda b, l: (b, 0, l)),
                pl.BlockSpec((tb, tl, K), lambda b, l: (b, l, 0)),
            ],
            # Output written directly in its final [1, B, K] layout
            # (lane-dense along K) -- no trailing transpose pass.
            out_specs=pl.BlockSpec((1, tb, K), lambda b, l: (0, b, 0)),
            scratch_shapes=[pltpu.VMEM((tb, K), jnp.float32)],
        ),
        compiler_params=pltpu.CompilerParams(
            dimension_semantics=("parallel", "arbitrary"),  # batch -> 2 TCs on v7x
            vmem_limit_bytes=vmem_limit,
        ),
        cost_estimate=cost,
    )(scores_in, values)
    return out


class Attention:
    """Global Attention (Pallas). Mirrors the PyTorch module's structure."""

    def __init__(self, encoder_hidden_dim, decoder_hidden_dim):
        self.key_dim = encoder_hidden_dim * 2
        self.query_dim = decoder_hidden_dim

    def compute_score(self, query, encoder_outputs, mask):
        # TODO(synk): abstract (raises NotImplementedError) in the reference module.
        raise NotImplementedError

    @staticmethod
    def compute_context(scores, values):
        return compute_context(scores, values)

    def forward(self, query, encoder_outputs, mask):
        # TODO(synk): abstract (raises NotImplementedError) in the reference module.
        raise NotImplementedError


if __name__ == "__main__":
    # Small deterministic shapes consistent with the module's docstrings.
    batch_size = 2
    src_length = 8
    encoder_hidden_dim = 16
    decoder_hidden_dim = 32
    key_dim = encoder_hidden_dim * 2  # 32

    key = jax.random.PRNGKey(0)
    k1, k2 = jax.random.split(key)

    # scores: [batch_size, 1, src_length] (softmax-normalized attention weights)
    raw_scores = jax.random.normal(k1, (batch_size, 1, src_length), dtype=jnp.float32)
    scores = jax.nn.softmax(raw_scores, axis=-1)

    # values: encoder_outputs.permute(1, 0, 2) -> [batch_size, src_length, enc_hidden*2]
    values = jax.random.normal(k2, (batch_size, src_length, key_dim), dtype=jnp.float32)

    attn = Attention(encoder_hidden_dim, decoder_hidden_dim)
    out = attn.compute_context(scores, values)
    out = jax.block_until_ready(out)

    # Reference check in plain JAX (same semantics as torch.bmm + permute).
    ref = jnp.transpose(jnp.einsum("bik,bkj->bij", scores, values), (1, 0, 2))
    assert out.shape == (1, batch_size, key_dim), out.shape
    assert jnp.allclose(out, ref, atol=1e-5, rtol=1e-5)

    print("KERNEL_OK")
</pallas_src>

<mosaic_0001>
module attributes {stable_mosaic.version = 11 : i64} {
  func.func @_context_kernel(%arg0: i32, %arg1: i32, %arg2: memref<2x1x8xf32, #tpu.memory_space<vmem>>, %arg3: memref<2x8x32xf32, #tpu.memory_space<vmem>>, %arg4: memref<1x2x32xf32, #tpu.memory_space<vmem>>, %arg5: memref<2x32xf32, #tpu.memory_space<vmem>>) attributes {dimension_semantics = [#tpu.dimension_semantics<parallel>, #tpu.dimension_semantics<arbitrary>], iteration_bounds = array<i64: 1, 1>, scalar_prefetch = 0 : i64, scratch_operands = 1 : i64, tpu.core_type = #tpu.core_type<tc>, window_params = [{transform_indices = @transform_0, window_bounds = array<i64: 2, 1, 8>}, {transform_indices = @transform_1, window_bounds = array<i64: 2, 8, 32>}, {transform_indices = @transform_2, window_bounds = array<i64: 1, 2, 32>}]} {
    %c0_i32 = arith.constant 0 : i32
    %0 = arith.cmpi eq, %arg1, %c0_i32 : i32
    %1 = arith.extui %0 : i1 to i32
    %c0_i32_0 = arith.constant 0 : i32
    %2 = arith.cmpi ne, %1, %c0_i32_0 : i32
    scf.if %2 {
      %cst_12 = arith.constant 0.000000e+00 : f32
      %13 = vector.broadcast %cst_12 : f32 to vector<2x32xf32>
      %c0_13 = arith.constant 0 : index
      %c0_14 = arith.constant 0 : index
      %14 = vector.load %arg5[%c0_13, %c0_14] : memref<2x32xf32, #tpu.memory_space<vmem>>, vector<2x32xf32>
      tpu.vector_store %arg5[%c0_13, %c0_14], %13 {strides = array<i32>} : memref<2x32xf32, #tpu.memory_space<vmem>>, vector<2x32xf32>,
    } else {
    }
    %c0 = arith.constant 0 : index
    %c0_1 = arith.constant 0 : index
    %c0_2 = arith.constant 0 : index
    %3 = vector.load %arg2[%c0, %c0_1, %c0_2] : memref<2x1x8xf32, #tpu.memory_space<vmem>>, vector<2x1x8xf32>
    %c0_3 = arith.constant 0 : index
    %c0_4 = arith.constant 0 : index
    %c0_5 = arith.constant 0 : index
    %4 = vector.load %arg3[%c0_3, %c0_4, %c0_5] : memref<2x8x32xf32, #tpu.memory_space<vmem>>, vector<2x8x32xf32>
    "tpu.trace_start"() <{level = 10 : i32, message = "bql,blk->bqk"}> : () -> ()
    %cst = arith.constant dense<0.000000e+00> : vector<2x1x32xf32>
    %5 = tpu.matmul %3, %4, %cst {dimension_numbers = #tpu.dot_dimension_numbers<[2], [1], [1], [2], [0, 0, 0, 1, 1, 2], [0], [0]>} : vector<2x1x8xf32>, vector<2x8x32xf32>, vector<2x1x32xf32> -> vector<2x1x32xf32>
    "tpu.trace_stop"() : () -> ()
    %c0_6 = arith.constant 0 : index
    %c0_7 = arith.constant 0 : index
    %6 = vector.load %arg5[%c0_6, %c0_7] : memref<2x32xf32, #tpu.memory_space<vmem>>, vector<2x32xf32>
    %7 = vector.shape_cast %5 : vector<2x1x32xf32> to vector<2x32xf32>
    %8 = arith.addf %6, %7 : vector<2x32xf32>
    %c0_8 = arith.constant 0 : index
    %c0_9 = arith.constant 0 : index
    %9 = vector.load %arg5[%c0_8, %c0_9] : memref<2x32xf32, #tpu.memory_space<vmem>>, vector<2x32xf32>
    tpu.vector_store %arg5[%c0_8, %c0_9], %8 {strides = array<i32>} : memref<2x32xf32, #tpu.memory_space<vmem>>, vector<2x32xf32>,
    %c0_i32_10 = arith.constant 0 : i32
    %10 = arith.cmpi eq, %arg1, %c0_i32_10 : i32
    %11 = arith.extui %10 : i1 to i32
    %c0_i32_11 = arith.constant 0 : i32
    %12 = arith.cmpi ne, %11, %c0_i32_11 : i32
    scf.if %12 {
      %c0_12 = arith.constant 0 : index
      %c0_13 = arith.constant 0 : index
      %13 = vector.load %arg5[%c0_12, %c0_13] : memref<2x32xf32, #tpu.memory_space<vmem>>, vector<2x32xf32>
      %c0_14 = arith.constant 0 : index
      %c0_15 = arith.constant 0 : index
      %c0_16 = arith.constant 0 : index
      %14 = vector.load %arg4[%c0_14, %c0_15, %c0_16] : memref<1x2x32xf32, #tpu.memory_space<vmem>>, vector<1x2x32xf32>
      %15 = vector.shape_cast %14 : vector<1x2x32xf32> to vector<2x32xf32>
      %16 = vector.shape_cast %13 : vector<2x32xf32> to vector<1x2x32xf32>
      tpu.vector_store %arg4[%c0_14, %c0_15, %c0_16], %16 {strides = array<i32>} : memref<1x2x32xf32, #tpu.memory_space<vmem>>, vector<1x2x32xf32>,
    } else {
    }
    return
  }
  func.func @transform_0(%arg0: i32, %arg1: i32) -> (i32, i32, i32) {
    %c0_i32 = arith.constant 0 : i32
    %c0_i32_0 = arith.constant 0 : i32
    return %arg0, %c0_i32, %arg1 : i32, i32, i32
  }
  func.func @transform_1(%arg0: i32, %arg1: i32) -> (i32, i32, i32) {
    %c0_i32 = arith.constant 0 : i32
    %c0_i32_0 = arith.constant 0 : i32
    return %arg0, %arg1, %c0_i32 : i32, i32, i32
  }
  func.func @transform_2(%arg0: i32, %arg1: i32) -> (i32, i32, i32) {
    %c0_i32 = arith.constant 0 : i32
    %c0_i32_0 = arith.constant 0 : i32
    %c0_i32_1 = arith.constant 0 : i32
    return %c0_i32, %arg0, %c0_i32_0 : i32, i32, i32
  }
}

</mosaic_0001>

<bundles_post_ra>
// kernel: tpu_custom_call.1
= control target key start
LH: loop header
LB: loop body
LE: loop exit
PB: predicated region body
PF: predicated region fallthrough
CT: control target
= control target key end

     0   :  { %7 = vsyncpa [#allocation4], 0  ;;  %s388_s0 = inlined_call_operand.hbm [shape: f32[2,1,8], index: 0, kind: input, shape index: {}]   ;;  %s389_s1 = inlined_call_operand.hbm [shape: f32[2,8,32], index: 1, kind: input, shape index: {}]   ;;  %s390_s2 = inlined_call_operand.hbm [shape: f32[1,2,32], index: 2, kind: output, shape index: {}]  }
   0x1   :  { %8 = vsyncpa [#allocation7], 0 }
   0x2   :  { %9 = vsyncpa [#allocation5], 0  ;;  %s325_s9 = smov [#allocation3]   ;;  %s253_s13 = scalar_lea.hbm %s388_s0, 32 }
   0x3   :  { %s15_s10 = sshll.u32 %s325_s9, 4  ;;  %p254_p0 = scmp.ne.s32.totalorder %s388_s0, %s253_s13  ;;  %s16_s10 = int_to_ptr.vmem [resolvable:$true] %s15_s10 }
   0x4   :  { %p257_p1 = scmp.lt.u32.totalorder %s253_s13, %s388_s0 }
   0x6   :  { %p259_p2 = pnand %p257_p1, %p254_p0 }
   0x8   :  { %262 = shalt.err (!%p259_p2)
}
   0x9   :  { %s263_s18 = scalar_lea.vmem %s16_s10, 32  ;;  %p268_p4 = scmp.lt.s32.totalorder %s16_s10, %s16_s10 }
   0xa   :  { %p264_p3 = scmp.ne.s32.totalorder %s16_s10, %s263_s18  ;;  %p269_p5 = scmp.lt.s32.totalorder %s263_s18, %s263_s18 }
   0xc   :  { %p270_p6 = por %p269_p5, %p268_p4 }
   0xe   :  { %p271_p7 = pnand %p270_p6, %p264_p3 }
  0x10   :  { %274 = shalt.err (!%p271_p7)
}
  0x11   :  { %s326_s19 = smov 16   ;;  %s327_s20 = smov 1  }
  0x12   :  { %21 = dma.hbm_to_vmem [thread:$0]  %s388_s0, 32, %s16_s10, [#allocation4], %s326_s19, %s326_s19, %s327_s20  }
  0x13   :  { %s328_s23 = smov [#allocation6]   ;;  %s275_s27 = scalar_lea.hbm %s389_s1, 256 }
  0x14   :  { %s27_s24 = sshll.u32 %s328_s23, 4  ;;  %p276_p8 = scmp.ne.s32.totalorder %s389_s1, %s275_s27  ;;  %s28_s24 = int_to_ptr.vmem [resolvable:$true] %s27_s24 }
  0x15   :  { %p279_p9 = scmp.lt.u32.totalorder %s275_s27, %s389_s1 }
  0x17   :  { %p281_p10 = pnand %p279_p9, %p276_p8 }
  0x19   :  { %284 = shalt.err (!%p281_p10)
}
  0x1a   :  { %s285_s4 = scalar_lea.vmem %s28_s24, 256  ;;  %p290_p12 = scmp.lt.s32.totalorder %s28_s24, %s28_s24 }
  0x1b   :  { %p286_p11 = scmp.ne.s32.totalorder %s28_s24, %s285_s4  ;;  %p291_p13 = scmp.lt.s32.totalorder %s285_s4, %s285_s4 }
  0x1d   :  { %p292_p0 = por %p291_p13, %p290_p12 }
  0x1f   :  { %p293_p1 = pnand %p292_p0, %p286_p11 }
  0x21   :  { %296 = shalt.err (!%p293_p1)
}
  0x22   :  { %s329_s0 = smov 128   ;;  %s330_s5 = smov 8  }
  0x23   :  { %33 = dma.hbm_to_vmem [thread:$0]  %s389_s1, 256, %s28_s24, [#allocation7], %s329_s0, %s329_s0, %s330_s5  }
  0x24   :  { %319 = dma.done.wait [#allocation4], 32  }
  0x25   :  { %320 = vsyncadd [#allocation4], 4294967264 }
  0x26   :  { %321 = dma.done.wait [#allocation7], 256  }
  0x27   :  { %322 = vsyncadd [#allocation7], 4294967040  ;;  %v331_v0 = vmov 0.0   ;;  %vm332_vm0 = vmmov 0   ;;  %vm50_vm1 = vcmask 64512   ;;  %v49_v1 = vld [vmem:[#allocation6 + $0x8] sm:$0xff] }
  0x28   :  { %239 = vmatprep.subr.mxu1 %v331_v0  ;;  %234 = vmatprep.subr.mxu0 %v331_v0  ;;  %v48_v2 = vld [vmem:[#allocation6] sm:$0xff]  ;;  %v47_v3 = vld [vmem:[#allocation3 + $0x1] sm:$0x1]  ;;  %v46_v4 = vld [vmem:[#allocation3] sm:$0x1]  ;;  %vm44_vm2 = vcmask 254976  }
  0x29   :  { %241 = vmatprep.mubr.msk.f32.mxu1 %vm332_vm0, %v331_v0  ;;  %236 = vmatprep.mubr.msk.f32.mxu0 %vm332_vm0, %v331_v0  ;;  %45 = vst.msk [vmem:[#allocation2] sm:$0x3] %vm44_vm2, %v331_v0  ;;  %vm201_vm3 = vcmask 1041409   ;;  %s333_s1 = smov [#allocation8]  }
  0x2a   :  { %240 = vmatpush3.msra.mxu1 %v49_v1  ;;  %235 = vmatpush3.msra.mxu0 %v48_v2  ;;  %s218_s8 = sshll.u32 %s333_s1, 4  ;;  %s219_s8 = int_to_ptr.vmem [resolvable:$true] %s218_s8 }
  0x2b   :  { %242 = vmatmul.mubr.msk.f32.vlgmr.msra.gmra.mrb[0].mxu1 %vm50_vm1, %v47_v3  ;;  %237 = vmatmul.mubr.msk.f32.vlgmr.msra.gmra.mrb[0].mxu0 %vm50_vm1, %v46_v4  ;;  %s297_s9 = scalar_lea.vmem %s219_s8, 32  ;;  %p302_p3 = scmp.lt.s32.totalorder %s219_s8, %s219_s8 }
  0x2c   :  { %p298_p2 = scmp.ne.s32.totalorder %s219_s8, %s297_s9  ;;  %p303_p4 = scmp.lt.s32.totalorder %s297_s9, %s297_s9 }
  0x2e   :  { %p304_p5 = por %p303_p4, %p302_p3 }
  0x30   :  { %v197_v8 = vld [vmem:[#allocation2] sm:$0x3]  ;;  %p305_p6 = pnand %p304_p5, %p298_p2 }
  0xfe   :  { %v193_v5 = vpop.f32.mrb[0].mxu1  ;;  %v120_v6 = vpop.f32.mrb[0].mxu0 }
  0xff   :  { %v200_v7 = vrot.slane %v193_v5, 7  ;;  %v243_v9 = vpop.f32.mrb[1].mxu1  ;;  %v238_v10 = vpop.f32.mrb[1].mxu0 }
 0x101   :  { %v202_v11 = vsel %vm201_vm3, %v200_v7, %v120_v6 }
 0x102   :  { %v204_v12 = vadd.f32 %v202_v11, %v197_v8 }
 0x104   :  { %206 = vst.msk [vmem:[#allocation2] sm:$0x3] %vm44_vm2, %v204_v12 }
 0x10b   :  { %v210_v13 = vld [vmem:[#allocation2] sm:$0x3] }
 0x10c   :  { %211 = vst.msk [vmem:[#allocation8] sm:$0x3] %vm44_vm2, %v210_v13 }
 0x10d   :  { %308 = shalt.err (!%p305_p6)
}
 0x10e   :  { %s309_s12 = scalar_lea.hbm %s390_s2, 32 }
 0x10f   :  { %p310_p7 = scmp.ne.s32.totalorder %s390_s2, %s309_s12  ;;  %p313_p8 = scmp.lt.u32.totalorder %s309_s12, %s390_s2 }
 0x111   :  { %p315_p9 = pnand %p313_p8, %p310_p7 }
 0x113   :  { %318 = shalt.err (!%p315_p9)
}
 0x114   :  { %221 = dma.vmem_to_hbm [thread:$0]  %s219_s8, 32, %s390_s2, [#allocation5]  }
 0x115   :  { %323 = dma.done.wait [#allocation5], 32  }
 0x116   :  { %324 = vsyncadd [#allocation5], 4294967264 }
 0x117   :  { %225 = vsyncpa [#allocation4], 1 }
 0x118   :  { %226 = vsyncpa [#allocation7], 1 }
 0x119   :  { %227 = vsyncpa [#allocation5], 1 }

</bundles_post_ra>
